<compile_context>
chip_gen: v7x
topology: tpu7x:2x2x1
jax: 0.10.0
libtpu: 0.0.40
codegen_flags: <defaults>
</compile_context>

<pallas_src>
import jax
import jax.numpy as jnp
from jax.experimental import pallas as pl
from jax.experimental.pallas import tpu as pltpu


def _round_up(x, m):
    return ((x + m - 1) // m) * m


def _vmem_limit_bytes():
    # ~75% of physical VMEM: ~96 MiB on v5e/v6e (128 MiB), ~48 MiB on v7x (64 MiB).
    cap = 128 * 1024 * 1024
    try:
        info = pltpu.get_tpu_info()
        cap = int(getattr(info, "vmem_capacity_bytes", cap) or cap)
    except Exception:
        pass
    return max(32 * 1024 * 1024, min((cap * 3) // 4, 100 * 1024 * 1024))


def _conv3x3_row_kernel(x0_ref, x1_ref, x2_ref, w_ref, *rest):
    """One output row (all batches) x one out-channel tile per grid step.

    x{0,1,2}_ref: (B, W+2, Cp)   rows h, h+1, h+2 of the padded NHWC input
    w_ref:        (3, 3, Cp, tn) weight tile, layout (kh, kw, c, o)
    b_ref:        (1, tn)        optional f32 bias tile
    o_ref:        (B, W, tn)     output row tile (NHWC, padded out-channels)
    """
    if len(rest) == 2:
        b_ref, o_ref = rest
    else:
        b_ref = None
        (o_ref,) = rest

    B, _, Cp = x0_ref.shape
    _, W, tn = o_ref.shape

    rows = (x0_ref[...], x1_ref[...], x2_ref[...])
    acc = jnp.zeros((B * W, tn), jnp.float32)
    for kh in range(3):
        r = rows[kh]
        for kw in range(3):
            lhs = r[:, kw:kw + W, :].reshape(B * W, Cp)
            acc = acc + jnp.dot(lhs, w_ref[kh, kw],
                                preferred_element_type=jnp.float32)
    if b_ref is not None:
        acc = acc + b_ref[...]
    o_ref[...] = acc.reshape(B, W, tn).astype(o_ref.dtype)


def conv3x3(x, weight, bias=None, *, compute_dtype=None, out_dtype=None,
            tn=None, out_layout="NCHW"):
    """Forward of the conv3x3 module (Conv2d 3x3, stride=1, padding=1, groups=1).

    x:      (B, C, H, W) NCHW (like the PyTorch module)
    weight: (O, C, 3, 3) OIHW
    bias:   optional (O,) — the module default is bias=False (pass None)
    compute_dtype: e.g. jnp.bfloat16 to stream input/weight in bf16
                   (f32 MXU accumulation either way).
    out_dtype: output dtype (default: x.dtype).
    out_layout: "NCHW" (module-faithful, default) or "NHWC" (skips the final
                transpose when the consumer accepts channels-last).
    """
    # TODO(synk): stride>1, dilation>1, groups>1 Conv2d variants not implemented
    # (the module's forward only uses the defaults: 3x3, stride 1, pad 1, groups 1).
    B, C, H, W = x.shape
    O = weight.shape[0]
    assert weight.shape == (O, C, 3, 3), "expected OIHW 3x3 weight"
    assert out_layout in ("NCHW", "NHWC")

    cd = jnp.dtype(compute_dtype) if compute_dtype is not None else x.dtype
    od = jnp.dtype(out_dtype) if out_dtype is not None else x.dtype

    Cp = _round_up(C, 8)         # sublane-friendly contraction dim (zero padded)
    Op = _round_up(O, 128)       # lane-dense output channels
    if tn is None:
        tn = 256 if (Op % 256 == 0 and Op >= 256) else 128
    assert Op % tn == 0

    # --- layout glue (cast FIRST so the one materialized copy is already cd) ---
    # (B, C, H, W) -> padded NHWC (B, H+2, W+2, Cp); ~1x|x| HBM round trip.
    xh = x.astype(cd).transpose(0, 2, 3, 1)
    xp = jnp.pad(xh, ((0, 0), (1, 1), (1, 1), (0, Cp - C)))

    # OIHW -> (kh, kw, c, o), zero-padded to (3, 3, Cp, Op).
    wt = weight.astype(cd).transpose(2, 3, 1, 0)
    wt = jnp.pad(wt, ((0, 0), (0, 0), (0, Cp - C), (0, Op - O)))

    n_tiles = Op // tn
    # h innermost so the weight tile stays resident across the whole image.
    # TODO(synk): add W/B tiling (and C tiling with a reduction axis) for
    # extreme shapes where a (B, W, tn) f32 row tile or (3,3,C,tn) weight tile
    # would no longer fit v7x's VMEM.
    grid = (n_tiles, H)

    def x_spec(kh):
        # H block size is 1 (squeezed), so the block index IS the row index and
        # the +kh halo shift is expressible with ordinary Blocked indexing.
        return pl.BlockSpec((B, None, W + 2, Cp),
                            lambda j, h, kh=kh: (0, h + kh, 0, 0))

    in_specs = [x_spec(0), x_spec(1), x_spec(2),
                pl.BlockSpec((3, 3, Cp, tn), lambda j, h: (0, 0, 0, j))]
    inputs = [xp, xp, xp, wt]

    if bias is not None:
        b_row = jnp.pad(bias.astype(jnp.float32).reshape(1, O),
                        ((0, 0), (0, Op - O)))
        in_specs.append(pl.BlockSpec((1, tn), lambda j, h: (0, j)))
        inputs.append(b_row)

    out_specs = pl.BlockSpec((B, None, W, tn), lambda j, h: (0, h, 0, j))

    cbytes = jnp.dtype(cd).itemsize
    cost = pl.CostEstimate(
        flops=2 * B * H * W * (9 * Cp) * Op,
        transcendentals=0,
        bytes_accessed=(3 * n_tiles * xp.size + wt.size) * cbytes
                       + B * H * W * Op * jnp.dtype(od).itemsize,
    )

    out = pl.pallas_call(
        _conv3x3_row_kernel,
        out_shape=jax.ShapeDtypeStruct((B, H, W, Op), od),
        grid_spec=pltpu.PrefetchScalarGridSpec(
            num_scalar_prefetch=0,
            grid=grid,
            in_specs=in_specs,
            out_specs=out_specs,
        ),
        compiler_params=pltpu.CompilerParams(
            dimension_semantics=("parallel", "parallel"),
            vmem_limit_bytes=_vmem_limit_bytes(),
        ),
        cost_estimate=cost,
    )(*inputs)

    if Op != O:
        out = out[..., :O]                       # drop out-channel padding
    if out_layout == "NHWC":
        return out
    return out.transpose(0, 3, 1, 2)             # NHWC -> NCHW (module-faithful)


if __name__ == "__main__":
    # Small config consistent with the module: batch=2, in_channels=4,
    # out_channels=32, spatial 16x16, kernel 3x3, stride 1, padding 1, bias=False.
    B, C, H, W = 2, 4, 16, 16
    O = 32

    key = jax.random.PRNGKey(0)
    kx, kw = jax.random.split(key, 2)
    x = jax.random.normal(kx, (B, C, H, W), dtype=jnp.float32)
    weight = jax.random.normal(kw, (O, C, 3, 3), dtype=jnp.float32) * 0.1

    # Reference: plain 3x3 conv in XLA (same cross-correlation as nn.Conv2d).
    ref = jax.lax.conv_general_dilated(
        x, weight, window_strides=(1, 1), padding=((1, 1), (1, 1)),
        dimension_numbers=("NCHW", "OIHW", "NCHW"),
    )

    # f32 path (module-faithful: bias=False, NCHW out).
    out = jax.block_until_ready(conv3x3(x, weight, bias=None))
    assert out.shape == (B, O, H, W)
    assert jnp.allclose(out, ref, atol=1e-4, rtol=1e-4)

    # bf16 streaming path (f32 accumulation) — halves HBM bytes on the
    # dominant streams; looser tolerance.
    out_bf16 = jax.block_until_ready(conv3x3(x, weight, compute_dtype=jnp.bfloat16))
    assert jnp.allclose(out_bf16, ref, atol=5e-2, rtol=5e-2)

    # Bias variant (exercises the with-bias kernel specialization).
    bias_vec = jax.random.normal(jax.random.PRNGKey(1), (O,), dtype=jnp.float32)
    out_b = jax.block_until_ready(conv3x3(x, weight, bias=bias_vec))
    assert jnp.allclose(out_b, ref + bias_vec.reshape(1, O, 1, 1),
                        atol=1e-4, rtol=1e-4)

    # NHWC output path (skips the final NCHW transpose for NHWC consumers).
    out_nhwc = jax.block_until_ready(conv3x3(x, weight, out_layout="NHWC"))
    assert jnp.allclose(out_nhwc.transpose(0, 3, 1, 2), ref, atol=1e-4, rtol=1e-4)

    print("KERNEL_OK")
</pallas_src>

<mosaic_0001>
module attributes {stable_mosaic.version = 11 : i64} {
  func.func @_conv3x3_row_kernel(%arg0: i32, %arg1: i32, %arg2: memref<2x1x18x8xf32, #tpu.memory_space<vmem>>, %arg3: memref<2x1x18x8xf32, #tpu.memory_space<vmem>>, %arg4: memref<2x1x18x8xf32, #tpu.memory_space<vmem>>, %arg5: memref<3x3x8x128xf32, #tpu.memory_space<vmem>>, %arg6: memref<2x1x16x128xf32, #tpu.memory_space<vmem>>) attributes {dimension_semantics = [#tpu.dimension_semantics<parallel>, #tpu.dimension_semantics<parallel>], iteration_bounds = array<i64: 1, 16>, scalar_prefetch = 0 : i64, scratch_operands = 0 : i64, tpu.core_type = #tpu.core_type<tc>, window_params = [{transform_indices = @transform_0, window_bounds = array<i64: 2, 1, 18, 8>}, {transform_indices = @transform_1, window_bounds = array<i64: 2, 1, 18, 8>}, {transform_indices = @transform_2, window_bounds = array<i64: 2, 1, 18, 8>}, {transform_indices = @transform_3, window_bounds = array<i64: 3, 3, 8, 128>}, {transform_indices = @transform_4, window_bounds = array<i64: 2, 1, 16, 128>}]} {
    %c0 = arith.constant 0 : index
    %c0_0 = arith.constant 0 : index
    %c0_1 = arith.constant 0 : index
    %c0_2 = arith.constant 0 : index
    %0 = vector.load %arg2[%c0, %c0_0, %c0_1, %c0_2] : memref<2x1x18x8xf32, #tpu.memory_space<vmem>>, vector<2x1x18x8xf32>
    %1 = vector.shape_cast %0 : vector<2x1x18x8xf32> to vector<2x18x8xf32>
    %c0_3 = arith.constant 0 : index
    %c0_4 = arith.constant 0 : index
    %c0_5 = arith.constant 0 : index
    %c0_6 = arith.constant 0 : index
    %2 = vector.load %arg3[%c0_3, %c0_4, %c0_5, %c0_6] : memref<2x1x18x8xf32, #tpu.memory_space<vmem>>, vector<2x1x18x8xf32>
    %3 = vector.shape_cast %2 : vector<2x1x18x8xf32> to vector<2x18x8xf32>
    %c0_7 = arith.constant 0 : index
    %c0_8 = arith.constant 0 : index
    %c0_9 = arith.constant 0 : index
    %c0_10 = arith.constant 0 : index
    %4 = vector.load %arg4[%c0_7, %c0_8, %c0_9, %c0_10] : memref<2x1x18x8xf32, #tpu.memory_space<vmem>>, vector<2x1x18x8xf32>
    %5 = vector.shape_cast %4 : vector<2x1x18x8xf32> to vector<2x18x8xf32>
    %cst = arith.constant 0.000000e+00 : f32
    %6 = vector.broadcast %cst : f32 to vector<32x128xf32>
    %7 = vector.extract_strided_slice %1 {offsets = [0, 0, 0], sizes = [2, 16, 8], strides = [1, 1, 1]} : vector<2x18x8xf32> to vector<2x16x8xf32>
    %8 = vector.shape_cast %7 : vector<2x16x8xf32> to vector<32x8xf32>
    %c0_11 = arith.constant 0 : index
    %c0_12 = arith.constant 0 : index
    %c0_13 = arith.constant 0 : index
    %c0_14 = arith.constant 0 : index
    %9 = vector.load %arg5[%c0_11, %c0_12, %c0_13, %c0_14] : memref<3x3x8x128xf32, #tpu.memory_space<vmem>>, vector<1x1x8x128xf32>
    %10 = vector.shape_cast %9 : vector<1x1x8x128xf32> to vector<8x128xf32>
    %cst_15 = arith.constant dense<0.000000e+00> : vector<32x128xf32>
    %11 = tpu.matmul %8, %10, %cst_15 {dimension_numbers = #tpu.dot_dimension_numbers<[1], [0], [0], [1], [0, 0, 1, 1], [], []>} : vector<32x8xf32>, vector<8x128xf32>, vector<32x128xf32> -> vector<32x128xf32>
    %12 = arith.addf %6, %11 : vector<32x128xf32>
    %13 = vector.extract_strided_slice %1 {offsets = [0, 1, 0], sizes = [2, 16, 8], strides = [1, 1, 1]} : vector<2x18x8xf32> to vector<2x16x8xf32>
    %14 = vector.shape_cast %13 : vector<2x16x8xf32> to vector<32x8xf32>
    %c0_16 = arith.constant 0 : index
    %c1 = arith.constant 1 : index
    %c0_17 = arith.constant 0 : index
    %c0_18 = arith.constant 0 : index
    %15 = vector.load %arg5[%c0_16, %c1, %c0_17, %c0_18] : memref<3x3x8x128xf32, #tpu.memory_space<vmem>>, vector<1x1x8x128xf32>
    %16 = vector.shape_cast %15 : vector<1x1x8x128xf32> to vector<8x128xf32>
    %cst_19 = arith.constant dense<0.000000e+00> : vector<32x128xf32>
    %17 = tpu.matmul %14, %16, %cst_19 {dimension_numbers = #tpu.dot_dimension_numbers<[1], [0], [0], [1], [0, 0, 1, 1], [], []>} : vector<32x8xf32>, vector<8x128xf32>, vector<32x128xf32> -> vector<32x128xf32>
    %18 = arith.addf %12, %17 : vector<32x128xf32>
    %19 = vector.extract_strided_slice %1 {offsets = [0, 2, 0], sizes = [2, 16, 8], strides = [1, 1, 1]} : vector<2x18x8xf32> to vector<2x16x8xf32>
    %20 = vector.shape_cast %19 : vector<2x16x8xf32> to vector<32x8xf32>
    %c0_20 = arith.constant 0 : index
    %c2 = arith.constant 2 : index
    %c0_21 = arith.constant 0 : index
    %c0_22 = arith.constant 0 : index
    %21 = vector.load %arg5[%c0_20, %c2, %c0_21, %c0_22] : memref<3x3x8x128xf32, #tpu.memory_space<vmem>>, vector<1x1x8x128xf32>
    %22 = vector.shape_cast %21 : vector<1x1x8x128xf32> to vector<8x128xf32>
    %cst_23 = arith.constant dense<0.000000e+00> : vector<32x128xf32>
    %23 = tpu.matmul %20, %22, %cst_23 {dimension_numbers = #tpu.dot_dimension_numbers<[1], [0], [0], [1], [0, 0, 1, 1], [], []>} : vector<32x8xf32>, vector<8x128xf32>, vector<32x128xf32> -> vector<32x128xf32>
    %24 = arith.addf %18, %23 : vector<32x128xf32>
    %25 = vector.extract_strided_slice %3 {offsets = [0, 0, 0], sizes = [2, 16, 8], strides = [1, 1, 1]} : vector<2x18x8xf32> to vector<2x16x8xf32>
    %26 = vector.shape_cast %25 : vector<2x16x8xf32> to vector<32x8xf32>
    %c1_24 = arith.constant 1 : index
    %c0_25 = arith.constant 0 : index
    %c0_26 = arith.constant 0 : index
    %c0_27 = arith.constant 0 : index
    %27 = vector.load %arg5[%c1_24, %c0_25, %c0_26, %c0_27] : memref<3x3x8x128xf32, #tpu.memory_space<vmem>>, vector<1x1x8x128xf32>
    %28 = vector.shape_cast %27 : vector<1x1x8x128xf32> to vector<8x128xf32>
    %cst_28 = arith.constant dense<0.000000e+00> : vector<32x128xf32>
    %29 = tpu.matmul %26, %28, %cst_28 {dimension_numbers = #tpu.dot_dimension_numbers<[1], [0], [0], [1], [0, 0, 1, 1], [], []>} : vector<32x8xf32>, vector<8x128xf32>, vector<32x128xf32> -> vector<32x128xf32>
    %30 = arith.addf %24, %29 : vector<32x128xf32>
    %31 = vector.extract_strided_slice %3 {offsets = [0, 1, 0], sizes = [2, 16, 8], strides = [1, 1, 1]} : vector<2x18x8xf32> to vector<2x16x8xf32>
    %32 = vector.shape_cast %31 : vector<2x16x8xf32> to vector<32x8xf32>
    %c1_29 = arith.constant 1 : index
    %c1_30 = arith.constant 1 : index
    %c0_31 = arith.constant 0 : index
    %c0_32 = arith.constant 0 : index
    %33 = vector.load %arg5[%c1_29, %c1_30, %c0_31, %c0_32] : memref<3x3x8x128xf32, #tpu.memory_space<vmem>>, vector<1x1x8x128xf32>
    %34 = vector.shape_cast %33 : vector<1x1x8x128xf32> to vector<8x128xf32>
    %cst_33 = arith.constant dense<0.000000e+00> : vector<32x128xf32>
    %35 = tpu.matmul %32, %34, %cst_33 {dimension_numbers = #tpu.dot_dimension_numbers<[1], [0], [0], [1], [0, 0, 1, 1], [], []>} : vector<32x8xf32>, vector<8x128xf32>, vector<32x128xf32> -> vector<32x128xf32>
    %36 = arith.addf %30, %35 : vector<32x128xf32>
    %37 = vector.extract_strided_slice %3 {offsets = [0, 2, 0], sizes = [2, 16, 8], strides = [1, 1, 1]} : vector<2x18x8xf32> to vector<2x16x8xf32>
    %38 = vector.shape_cast %37 : vector<2x16x8xf32> to vector<32x8xf32>
    %c1_34 = arith.constant 1 : index
    %c2_35 = arith.constant 2 : index
    %c0_36 = arith.constant 0 : index
    %c0_37 = arith.constant 0 : index
    %39 = vector.load %arg5[%c1_34, %c2_35, %c0_36, %c0_37] : memref<3x3x8x128xf32, #tpu.memory_space<vmem>>, vector<1x1x8x128xf32>
    %40 = vector.shape_cast %39 : vector<1x1x8x128xf32> to vector<8x128xf32>
    %cst_38 = arith.constant dense<0.000000e+00> : vector<32x128xf32>
    %41 = tpu.matmul %38, %40, %cst_38 {dimension_numbers = #tpu.dot_dimension_numbers<[1], [0], [0], [1], [0, 0, 1, 1], [], []>} : vector<32x8xf32>, vector<8x128xf32>, vector<32x128xf32> -> vector<32x128xf32>
    %42 = arith.addf %36, %41 : vector<32x128xf32>
    %43 = vector.extract_strided_slice %5 {offsets = [0, 0, 0], sizes = [2, 16, 8], strides = [1, 1, 1]} : vector<2x18x8xf32> to vector<2x16x8xf32>
    %44 = vector.shape_cast %43 : vector<2x16x8xf32> to vector<32x8xf32>
    %c2_39 = arith.constant 2 : index
    %c0_40 = arith.constant 0 : index
    %c0_41 = arith.constant 0 : index
    %c0_42 = arith.constant 0 : index
    %45 = vector.load %arg5[%c2_39, %c0_40, %c0_41, %c0_42] : memref<3x3x8x128xf32, #tpu.memory_space<vmem>>, vector<1x1x8x128xf32>
    %46 = vector.shape_cast %45 : vector<1x1x8x128xf32> to vector<8x128xf32>
    %cst_43 = arith.constant dense<0.000000e+00> : vector<32x128xf32>
    %47 = tpu.matmul %44, %46, %cst_43 {dimension_numbers = #tpu.dot_dimension_numbers<[1], [0], [0], [1], [0, 0, 1, 1], [], []>} : vector<32x8xf32>, vector<8x128xf32>, vector<32x128xf32> -> vector<32x128xf32>
    %48 = arith.addf %42, %47 : vector<32x128xf32>
    %49 = vector.extract_strided_slice %5 {offsets = [0, 1, 0], sizes = [2, 16, 8], strides = [1, 1, 1]} : vector<2x18x8xf32> to vector<2x16x8xf32>
    %50 = vector.shape_cast %49 : vector<2x16x8xf32> to vector<32x8xf32>
    %c2_44 = arith.constant 2 : index
    %c1_45 = arith.constant 1 : index
    %c0_46 = arith.constant 0 : index
    %c0_47 = arith.constant 0 : index
    %51 = vector.load %arg5[%c2_44, %c1_45, %c0_46, %c0_47] : memref<3x3x8x128xf32, #tpu.memory_space<vmem>>, vector<1x1x8x128xf32>
    %52 = vector.shape_cast %51 : vector<1x1x8x128xf32> to vector<8x128xf32>
    %cst_48 = arith.constant dense<0.000000e+00> : vector<32x128xf32>
    %53 = tpu.matmul %50, %52, %cst_48 {dimension_numbers = #tpu.dot_dimension_numbers<[1], [0], [0], [1], [0, 0, 1, 1], [], []>} : vector<32x8xf32>, vector<8x128xf32>, vector<32x128xf32> -> vector<32x128xf32>
    %54 = arith.addf %48, %53 : vector<32x128xf32>
    %55 = vector.extract_strided_slice %5 {offsets = [0, 2, 0], sizes = [2, 16, 8], strides = [1, 1, 1]} : vector<2x18x8xf32> to vector<2x16x8xf32>
    %56 = vector.shape_cast %55 : vector<2x16x8xf32> to vector<32x8xf32>
    %c2_49 = arith.constant 2 : index
    %c2_50 = arith.constant 2 : index
    %c0_51 = arith.constant 0 : index
    %c0_52 = arith.constant 0 : index
    %57 = vector.load %arg5[%c2_49, %c2_50, %c0_51, %c0_52] : memref<3x3x8x128xf32, #tpu.memory_space<vmem>>, vector<1x1x8x128xf32>
    %58 = vector.shape_cast %57 : vector<1x1x8x128xf32> to vector<8x128xf32>
    %cst_53 = arith.constant dense<0.000000e+00> : vector<32x128xf32>
    %59 = tpu.matmul %56, %58, %cst_53 {dimension_numbers = #tpu.dot_dimension_numbers<[1], [0], [0], [1], [0, 0, 1, 1], [], []>} : vector<32x8xf32>, vector<8x128xf32>, vector<32x128xf32> -> vector<32x128xf32>
    %60 = arith.addf %54, %59 : vector<32x128xf32>
    %61 = vector.shape_cast %60 : vector<32x128xf32> to vector<2x16x128xf32>
    %c0_54 = arith.constant 0 : index
    %c0_55 = arith.constant 0 : index
    %c0_56 = arith.constant 0 : index
    %c0_57 = arith.constant 0 : index
    %62 = vector.load %arg6[%c0_54, %c0_55, %c0_56, %c0_57] : memref<2x1x16x128xf32, #tpu.memory_space<vmem>>, vector<2x1x16x128xf32>
    %63 = vector.shape_cast %62 : vector<2x1x16x128xf32> to vector<2x16x128xf32>
    %64 = vector.shape_cast %61 : vector<2x16x128xf32> to vector<2x1x16x128xf32>
    tpu.vector_store %arg6[%c0_54, %c0_55, %c0_56, %c0_57], %64 {strides = array<i32>} : memref<2x1x16x128xf32, #tpu.memory_space<vmem>>, vector<2x1x16x128xf32>,
    return
  }
  func.func @transform_0(%arg0: i32, %arg1: i32) -> (i32, i32, i32, i32) {
    %c0_i32 = arith.constant 0 : i32
    %0 = arith.addi %arg1, %c0_i32 : i32
    %c0_i32_0 = arith.constant 0 : i32
    %c0_i32_1 = arith.constant 0 : i32
    %c0_i32_2 = arith.constant 0 : i32
    %c0_i32_3 = arith.constant 0 : i32
    return %c0_i32_0, %0, %c0_i32_1, %c0_i32_2 : i32, i32, i32, i32
  }
  func.func @transform_1(%arg0: i32, %arg1: i32) -> (i32, i32, i32, i32) {
    %c1_i32 = arith.constant 1 : i32
    %0 = arith.addi %arg1, %c1_i32 : i32
    %c0_i32 = arith.constant 0 : i32
    %c0_i32_0 = arith.constant 0 : i32
    %c0_i32_1 = arith.constant 0 : i32
    %c0_i32_2 = arith.constant 0 : i32
    return %c0_i32, %0, %c0_i32_0, %c0_i32_1 : i32, i32, i32, i32
  }
  func.func @transform_2(%arg0: i32, %arg1: i32) -> (i32, i32, i32, i32) {
    %c2_i32 = arith.constant 2 : i32
    %0 = arith.addi %arg1, %c2_i32 : i32
    %c0_i32 = arith.constant 0 : i32
    %c0_i32_0 = arith.constant 0 : i32
    %c0_i32_1 = arith.constant 0 : i32
    %c0_i32_2 = arith.constant 0 : i32
    return %c0_i32, %0, %c0_i32_0, %c0_i32_1 : i32, i32, i32, i32
  }
  func.func @transform_3(%arg0: i32, %arg1: i32) -> (i32, i32, i32, i32) {
    %c0_i32 = arith.constant 0 : i32
    %c0_i32_0 = arith.constant 0 : i32
    %c0_i32_1 = arith.constant 0 : i32
    %c0_i32_2 = arith.constant 0 : i32
    return %c0_i32, %c0_i32_0, %c0_i32_1, %arg0 : i32, i32, i32, i32
  }
  func.func @transform_4(%arg0: i32, %arg1: i32) -> (i32, i32, i32, i32) {
    %c0_i32 = arith.constant 0 : i32
    %c0_i32_0 = arith.constant 0 : i32
    %c0_i32_1 = arith.constant 0 : i32
    return %c0_i32, %arg1, %c0_i32_0, %arg0 : i32, i32, i32, i32
  }
}

</mosaic_0001>

<bundles_post_ra>
// kernel: tpu_custom_call.1
= control target key start
LH: loop header
LB: loop body
LE: loop exit
PB: predicated region body
PF: predicated region fallthrough
CT: control target
= control target key end

     0   :  { %s2654_s0 = inlined_call_operand.hbm [shape: f32[2,18,18,8], index: 0, kind: input, shape index: {}]   ;;  %s2655_s1 = inlined_call_operand.hbm [shape: f32[2,18,18,8], index: 1, kind: input, shape index: {}]   ;;  %s2656_s2 = inlined_call_operand.hbm [shape: f32[2,18,18,8], index: 2, kind: input, shape index: {}]   ;;  %s2657_s3 = inlined_call_operand.hbm [shape: f32[3,3,8,128], index: 3, kind: input, shape index: {}]   ;;  %s2658_s4 = inlined_call_operand.hbm [shape: f32[2,16,16,128], index: 4, kind: output, shape index: {}]  }
   0x1   :  { %2676 = sst [smem:[#allocation37_spill]] %s2654_s0 }
   0x2   :  { %2677 = sst [smem:[#allocation38_spill]] %s2657_s3 }
   0x3   :  { %2678 = sst [smem:[#allocation39_spill]] %s2658_s4 }
   0x4   :  { %9 = vsyncpa [#allocation3], 0 }
   0x5   :  { %11 = vsyncpa [#allocation3 + $0x1], 0 }
   0x6   :  { %12 = vsyncpa [#allocation6], 0 }
   0x7   :  { %14 = vsyncpa [#allocation6 + $0x1], 0 }
   0x8   :  { %15 = vsyncpa [#allocation9], 0 }
   0x9   :  { %16 = vsyncpa [#allocation4], 0 }
   0xa   :  { %18 = vsyncpa [#allocation4 + $0x1], 0  ;;  %s2167_s15 = smov 0   ;;  %s2169_s16 = smov 0  }
   0xb   :  { %s2171_s17 = smov 0   ;;  %s2173_s18 = smov 0  }
   0xc   :  { %s2175_s19 = smov 0   ;;  %s2177_s20 = smov 0  }
   0xd   :  { %s2179_s21 = smov 0   ;;  %s2181_s22 = smov 0  }
   0xe   :  { %s2183_s23 = smov 0   ;;  %s2185_s24 = smov 0  }
   0xf   :  { %s2187_s25 = smov 0   ;;  %s2189_s26 = smov 0  }
  0x10 LB: > { %2679 = sst [smem:[#allocation27_spill]] %s2092_s21  ;;  %s2228_s27 = sadd.s32 4294967295, %s2112_s26   ;;  %s2112_s26 = sphi %s2189_s26, %s24_s26   ;;  %s2108_s25 = sphi %s2187_s25, %s2724_s25   ;;  %s2104_s24 = sphi %s2185_s24, %s2723_s24   ;;  %s2100_s23 = sphi %s2183_s23, %s2722_s23   ;;  %s2096_s22 = sphi %s2181_s22, %s2732_s22   ;;  %s2092_s21 = sphi %s2179_s21, %s2731_s21   ;;  %s2088_s20 = sphi %s2177_s20, %s2730_s20   ;;  %s2084_s19 = sphi %s2175_s19, %s2729_s19   ;;  %s2080_s18 = sphi %s2173_s18, %s2728_s18   ;;  %s2076_s17 = sphi %s2171_s17, %s2727_s17   ;;  %s2072_s16 = sphi %s2169_s16, %s2726_s16   ;;  %s2068_s15 = sphi %s2167_s15, %s2725_s15  }
  0x11   : > { %2680 = sst [smem:[#allocation28_spill]] %s2100_s23  ;;  %s33_s29 = sadd.s32 1, %s2108_s25 }
  0x12   : > { %2681 = sst [smem:[#allocation29_spill]] %s2104_s24  ;;  %s43_s30 = sadd.s32 1, %s2100_s23 }
  0x13   : > { %2682 = sst [smem:[#allocation30_spill]] %s2108_s25  ;;  %p34_p0 = scmp.ge.s32.totalorder %s33_s29, 16 }
  0x14   : > { %p50_p1 = scmp.ne.s32.totalorder %s2100_s23, %s2096_s22  ;;  %p51_p2 = scmp.eq.s32.totalorder %s2112_s26, 0 }
  0x15   : > { %p2659_p3 = scmp.ne.s32.totalorder %s2096_s22, %s2092_s21  ;;  %p2668_p5 = scmp.eq.s32.totalorder %s2228_s27, 0 }
  0x16   : > { %s2238_s5 = scalar_select %p34_p0, 0, %s33_s29  }
  0x17   : > { %p2245_p4 = por %p51_p2, %p50_p1  ;;  %p2258_p7 = por %p2668_p5, %p2659_p3 }
  0x18   : > { %2683 = sst [smem:[#allocation31_spill]] %s2238_s5  ;;  %s40_s7 = ssub.s32 %s2108_s25, %s2238_s5 }
  0x19   : > { %s2684_s6 = scalar_select %p2245_p4, 1, 0 }
  0x1a   : > { %s67_s8 = sadd.s32 1, %s2238_s5  ;;  %p41_p6 = scmp.eq.s32.totalorder %s40_s7, 0 }
  0x1b   : > { %s2685_s9 = scalar_select %p2258_p7, 1, 0 }
  0x1c   : > { %s68_s10 = ssub.s32 %s33_s29, %s67_s8  ;;  %s71_s11 = sadd.s32 1, %s2088_s20 }
  0x1d   : > { %s2264_s12 = scalar_select %p41_p6, %s2100_s23, %s43_s30  }
  0x1e   : > { %p69_p8 = scmp.eq.s32.totalorder %s68_s10, 0  ;;  %p78_p9 = scmp.ne.s32.totalorder %s2088_s20, %s2084_s19 }
  0x1f   : > { %2686 = sst [smem:[#allocation32_spill]] %s2264_s12  ;;  %p84_p10 = scmp.ne.s32.totalorder %s2084_s19, %s2080_s18 }
  0x20   : > { %s94_s13 = sadd.s32 2, %s2108_s25  ;;  %p2276_p11 = por %p78_p9, %p51_p2 }
  0x21   : > { %s2272_s14 = scalar_select %p69_p8, %s2088_s20, %s71_s11  }
  0x22   : > { %s2688_s29 = scalar_select %p2276_p11, 1, 0 }
  0x23   : > { %2687 = sst [smem:[#allocation33_spill]] %s2272_s14  ;;  %p2282_p12 = por %p84_p10, %p2668_p5 }
  0x24   : > { %s95_s7 = sadd.s32 2, %s2238_s5  ;;  %s99_s18 = sadd.s32 1, %s2076_s17 }
  0x25   : > { %s2689_s30 = scalar_select %p2282_p12, 1, 0 }
  0x26   : > { %s96_s8 = ssub.s32 %s94_s13, %s95_s7  ;;  %p106_p13 = scmp.ne.s32.totalorder %s2076_s17, %s2072_s16 }
  0x27   : > { %p97_p0 = scmp.eq.s32.totalorder %s96_s8, 0  ;;  %p112_p6 = scmp.ne.s32.totalorder %s2072_s16, %s2068_s15 }
  0x28   : > { %p2294_p8 = por %p106_p13, %p51_p2  ;;  %p164_p9 = scmp.eq.s32.totalorder %s2228_s27, 15 }
  0x29   : > { %s2300_s11 = scalar_select %p97_p0, %s2076_s17, %s99_s18  }
  0x2a   : > { %s2690_s10 = scalar_select %p2294_p8, 1, 0 }
  0x2b   : > { %2691 = sst [smem:[#allocation34_spill]] %s2300_s11  ;;  %p2304_p10 = por %p112_p6, %p2668_p5 }
  0x2c   : > { %p2311_p3 = por %p164_p9, %p50_p1  ;;  %s2695_s7 = sadd.s32 4294967294, %s2112_s26  }
  0x2d   : > { %s2692_s28 = scalar_select %p2304_p10, 1, 0 }
  0x2e   : > { %s2693_s13 = scalar_select %p2311_p3, 1, 0 }
  0x2f   : > { %p170_p12 = scmp.eq.s32.totalorder %s2695_s7, 15  ;;  %p1583_p7 = scmp.ge.s32.totalorder %s2112_s26, 1 }
  0x30   : > { %2694 = sst [smem:[#allocation35_spill]] %s2693_s13  ;;  %p177_p2 = scmp.lt.s32.totalorder %s2112_s26, 17 }
  0x31   : > { %p2696_p13 = scmp.ne.s32.totalorder %s2096_s22, %s2092_s21  ;;  %s2114_s8 = smov [#allocation8]  }
  0x32   : > { %p2326_p0 = pnand %p1583_p7, %p177_p2  ;;  %s191_s5 = sshll.u32 %s2114_s8, 4  ;;  %s192_s5 = int_to_ptr.vmem [resolvable:$true] %s191_s5 }
  0x33   : > { %p2322_p11 = por %p170_p12, %p2696_p13  ;;  %s2701_s3 = sld [smem:[#allocation38_spill]] }
  0x34   : > { %s2699_s18 = scalar_select %p2326_p0, 1, 0 }
  0x35   : > { %s2697_s15 = scalar_select %p2322_p11, 1, 0 }
  0x36   : > { %p1835_p1 = pneg %p2326_p0 }
  0x37   : > { %2698 = sst [smem:[#allocation36_spill]] %s2697_s15 }
  0x38   : > { %p2334_p6 = pnand %p1835_p1, %p2668_p5 }
  0x39   : > { %s1970_s11 = scalar_lea.hbm %s2701_s3, 1152 }
  0x3a   : > { %p1971_p7 = scmp.ne.s32.totalorder %s2701_s3, %s1970_s11  ;;  %p1972_p12 = pneg %p2334_p6 }
  0x3b   : > { %p1977_p13 = scmp.lt.u32.totalorder %s1970_s11, %s2701_s3 }
  0x3c   : > { %p1973_p9 = pnand %p1972_p12, %p1971_p7 }
  0x3e   : > { %p1974_p2 = pneg %p1973_p9 }
  0x40   : > { %p1979_p1 = pnand %p1977_p13, %p1974_p2 }
  0x42   : > { %1982 = shalt.err (!%p1979_p1)
}
  0x43   : > { %s1983_s13 = scalar_lea.vmem %s192_s5, 1152  ;;  %p1991_p10 = scmp.lt.s32.totalorder %s192_s5, %s192_s5 }
  0x44   : > { %p1984_p5 = scmp.ne.s32.totalorder %s192_s5, %s1983_s13  ;;  %p1992_p0 = scmp.lt.s32.totalorder %s1983_s13, %s1983_s13 }
  0x46   : > { %p1986_p11 = pnand %p1984_p5, %p1972_p12  ;;  %p1993_p8 = por %p1992_p0, %p1991_p10 }
  0x48   : > { %p1987_p3 = pneg %p1986_p11 }
  0x4a   : > { %p1994_p4 = pnand %p1993_p8, %p1987_p3 }
  0x4c   : > { %1997 = shalt.err (!%p1994_p4)
}
  0x4d   : > { %s2115_s21 = smov 128   ;;  %s2116_s12 = smov 8  }
  0x4e   : > { %1838 = dma.hbm_to_vmem [thread:$0]  (!%p2334_p6), %s2701_s3, 1152, %s192_s5, [#allocation9], %s2115_s21, %s2115_s21, %s2116_s12  }
  0x4f   : > { %p1585_p7 = scmp.ge.s32.totalorder %s2112_s26, 16 }
  0x51   : > { %201 = sbr.rel (%p1585_p7) target bundleno = 134 (0x86), region = 20 }
  0x58   : > { %s205_s4 = sand.u32 1, %s2100_s23   ;;  %s2357_s11 = smul.u32 384, %s2108_s25 }
  0x59   : > { %s1789_s13 = smul.u32 48, %s205_s4  ;;  %s2117_s7 = smov 6912  }
  0x5a   : > { %p2702_p3 = scmp.ne.s32.totalorder %s2684_s6, 0  ;;  %s2703_s0 = sld [smem:[#allocation37_spill]] }
  0x5b   : > { %s209_s15 = scalar_lea.vmem [#allocation2], %s1789_s13  ;;  %s2118_s23 = smov 384  }
  0x5c   : > { %1799 = sst [smem:[#allocation12]] (%p2702_p3), %s2117_s7  ;;  %s228_s3 = sshll.u32 %s209_s15, 4  ;;  %s229_s3 = int_to_ptr.vmem [resolvable:$true] %s228_s3 }
  0x5d   : > { %s1798_s5 = scalar_select %p2702_p3, [#allocation0], [#allocation19] }
  0x5e   : > { %1800 = sst [smem:[#allocation12 + $0x1]] (%p2702_p3), %s2118_s23  ;;  %s2119_s25 = smov 3  }
  0x5f   : > { %s220_s14 = sld [smem:[%s1798_s5]]   ;;  %s2120_s24 = smov 128  }
  0x60   : > { %s215_s12 = scalar_lea.hbm %s2703_s0, %s2357_s11  ;;  %1801 = sst [smem:[#allocation12 + $0x2]] (%p2702_p3), %s2119_s25 }
  0x61   : > { %1802 = sst [smem:[#allocation12 + $0x3]] (%p2702_p3), %s2120_s24  ;;  %s2121_s7 = smov 8  }
  0x62   : > { %1803 = sst [smem:[#allocation12 + $0x4]] (%p2702_p3), %s2120_s24  ;;  %s206_s13 = scalar_lea.sflag [#allocation3], %s205_s4 }
  0x63   : > { %1804 = sst [smem:[#allocation12 + $0x5]] (%p2702_p3), %s2121_s7  ;;  %s2122_s21 = smov [#allocation11]  }
  0x65   : > { %s1587_s8 = sshll.u32 %s220_s14, 26 }
  0x66   : > { %s1588_s5 = sadd.s32 134217728, %s1587_s8 }
  0x67   : > { %1805 = dma.general (%p2702_p3), %s215_s12, 768, %s229_s3, %s206_s13, %s2122_s21, [#allocation12], %s1588_s5, 0  }
  0x68   : > { %s251_s23 = sand.u32 1, %s2112_s26   ;;  %s253_s25 = sand.u32 1, %s2088_s20  }
  0x69   : > { %s1791_s24 = smul.u32 48, %s253_s25  ;;  %s1483_s14 = scalar_lea.hbm %s2655_s1, %s2357_s11 }
  0x6a   : > { %p2704_p4 = scmp.ne.s32.totalorder %s2688_s29, 0  ;;  %s1484_s6 = scalar_lea.hbm %s1483_s14, 384 }
  0x6b   : > { %s2123_s3 = smov 6912   ;;  %s255_s7 = scalar_lea.vmem [#allocation5], %s1791_s24 }
  0x6c   : > { %s1806_s4 = scalar_select %p2704_p4, [#allocation0], [#allocation20] }
  0x6d   : > { %1807 = sst [smem:[#allocation14]] (%p2704_p4), %s2123_s3  ;;  %s275_s8 = sshll.u32 %s255_s7, 4  ;;  %s276_s8 = int_to_ptr.vmem [resolvable:$true] %s275_s8 }
  0x6e   : > { %s267_s12 = sld [smem:[%s1806_s4]]   ;;  %s2124_s5 = smov 384  }
  0x6f   : > { %1808 = sst [smem:[#allocation14 + $0x1]] (%p2704_p4), %s2124_s5  ;;  %s2125_s13 = smov 3  }
  0x70   : > { %1809 = sst [smem:[#allocation14 + $0x2]] (%p2704_p4), %s2125_s13  ;;  %s2126_s0 = smov 128  }
  0x71   : > { %1810 = sst [smem:[#allocation14 + $0x3]] (%p2704_p4), %s2126_s0  ;;  %s2127_s25 = smov 8  }
  0x72   : > { %1811 = sst [smem:[#allocation14 + $0x4]] (%p2704_p4), %s2126_s0  ;;  %s2399_s24 = scalar_lea.sflag [#allocation6], %s251_s23 }
  0x73   : > { %1812 = sst [smem:[#allocation14 + $0x5]] (%p2704_p4), %s2127_s25  ;;  %s2128_s14 = smov [#allocation13]  }
  0x74   : > { %s1589_s21 = sshll.u32 %s267_s12, 26 }
  0x75   : > { %s1590_s15 = sadd.s32 134217728, %s1589_s21 }
  0x76   : > { %1813 = dma.general (%p2704_p4), %s1484_s6, 768, %s276_s8, %s2399_s24, %s2128_s14, [#allocation14], %s1590_s15, 0  }
  0x77   : > { %s300_s4 = sand.u32 1, %s2076_s17   ;;  %s1489_s12 = scalar_lea.hbm %s2656_s2, %s2357_s11 }
  0x78   : > { %s1792_s5 = smul.u32 48, %s300_s4  ;;  %s1490_s23 = scalar_lea.hbm %s1489_s12, 768 }
  0x79   : > { %p2705_p5 = scmp.ne.s32.totalorder %s2690_s10, 0  ;;  %s2129_s8 = smov 6912  }
  0x7a   : > { %s302_s29 = scalar_lea.vmem [#allocation7], %s1792_s5  ;;  %s2130_s21 = smov 384  }
  0x7b   : > { %s1814_s13 = scalar_select %p2705_p5, [#allocation0], [#allocation21] }
  0x7c   : > { %s322_s6 = sshll.u32 %s302_s29, 4  ;;  %1815 = sst [smem:[#allocation16]] (%p2705_p5), %s2129_s8  ;;  %s323_s6 = int_to_ptr.vmem [resolvable:$true] %s322_s6 }
  0x7d   : > { %s314_s0 = sld [smem:[%s1814_s13]]   ;;  %s2131_s25 = smov 3  }
  0x7e   : > { %1816 = sst [smem:[#allocation16 + $0x1]] (%p2705_p5), %s2130_s21  ;;  %s2132_s11 = smov 128  }
  0x7f   : > { %1817 = sst [smem:[#allocation16 + $0x2]] (%p2705_p5), %s2131_s25  ;;  %s2133_s4 = smov 8  }
  0x80   : > { %1818 = sst [smem:[#allocation16 + $0x3]] (%p2705_p5), %s2132_s11  ;;  %s2134_s3 = smov [#allocation15]  }
  0x81   : > { %1819 = sst [smem:[#allocation16 + $0x4]] (%p2705_p5), %s2132_s11 }
  0x82   : > { %1820 = sst [smem:[#allocation16 + $0x5]] (%p2705_p5), %s2133_s4 }
  0x83   : > { %s1591_s15 = sshll.u32 %s314_s0, 26 }
  0x84   : > { %s1592_s14 = sadd.s32 134217728, %s1591_s15 }
  0x85   : > { %1821 = dma.general (%p2705_p5), %s1490_s23, 768, %s323_s6, %s2399_s24, %s2134_s3, [#allocation16], %s1592_s14, 0  }
  0x86 PF: > { %p2706_p11 = scmp.ne.s32.totalorder %s2699_s18, 0 }
  0x87   : > { %s2429_s7 = sand.u32 (!%p2706_p11), 1, %s2096_s22   ;;  %p2707_p8 = scmp.ne.s32.totalorder (!%p2706_p11), %s2685_s9, 0 }
  0x88   : > { %347 = sbr.rel (%p2706_p11) target bundleno = 432 (0x1b0), region = 36  ;;  %s350_s5 = scalar_lea.sflag (!%p2706_p11), [#allocation3], %s2429_s7 }
  0x89   : > { %s1793_s12 = smul.u32 (!%p2706_p11), 48, %s2429_s7 }
  0x8b   : > { %s2433_s13 = scalar_lea.vmem (!%p2706_p11), [#allocation2], %s1793_s12 }
  0x8f   : > { %2047 = dma.done.wait (%p2707_p8), %s350_s5, 768  }
  0x90   : > { %2049 = vsyncadd (%p2707_p8), %s350_s5, 4294966528  ;;  %s358_s10 = sand.u32 1, %s2228_s27   ;;  %s360_s18 = sand.u32 1, %s2084_s19  }
  0x91   : > { %s1794_s24 = smul.u32 48, %s360_s18  ;;  %s359_s23 = scalar_lea.sflag [#allocation6], %s358_s10 }
  0x92   : > { %p2708_p10 = scmp.ne.s32.totalorder %s2689_s30, 0 }
  0x93   : > { %s2441_s0 = scalar_lea.vmem [#allocation5], %s1794_s24 }
  0x94   : > { %2051 = dma.done.wait (%p2708_p10), %s359_s23, 768  }
  0x95   : > { %2053 = vsyncadd (%p2708_p10), %s359_s23, 4294966528  ;;  %s369_s29 = sand.u32 1, %s2072_s16   ;;  %p2709_p0 = scmp.ne.s32.totalorder %s2692_s28, 0 }
  0x96   : > { %s1795_s6 = smul.u32 48, %s369_s29 }
  0x98   : > { %s2448_s9 = scalar_lea.vmem [#allocation7], %s1795_s6 }
  0x99   : > { %2055 = dma.done.wait (%p2709_p0), %s359_s23, 768  }
  0x9a   : > { %2057 = vsyncadd (%p2709_p0), %s359_s23, 4294966528  ;;  %p2710_p6 = scmp.eq.s32.totalorder %s2228_s27, 0 }
  0x9c   : > { %2059 = dma.done.wait (%p2710_p6), [#allocation9], 1152   ;;  %p2711_p12 = pmov %p2710_p6 }
  0x9d   : > { %v449_v0 = vld [vmem:[#allocation8 + $0x8] sm:$0xff]  ;;  %v2458_v1 = vld [vmem:[#allocation8 + $0x20] sm:$0xff]  ;;  %vm437_vm0 = vcmask 1046528   ;;  %vm450_vm1 = vcmask 64512   ;;  %vm637_vm2 = vcmask 1045504   ;;  %v649_v26 = vld [vmem:[#allocation8 + $0x10] sm:$0xff] }
  0x9e   : > { %2061 = vsyncadd (%p2711_p12), [#allocation9], 4294966144  ;;  %v2461_v2 = vld [vmem:[%s2433_s13] sm:$0xff]  ;;  %1683 = vmatprep.subr.mxu1 %v449_v0  ;;  %1715 = vmatprep.subr.mxu0 %v2458_v1  ;;  %v2465_v3 = vld [vmem:[%s2433_s13 + $0x8] sm:$0xff]  ;;  %s1595_s27 = sshll.u32 %s2429_s7, 5  ;;  %s1398_s30 = scalar_lea.sflag [#allocation4], %s2429_s7 }
  0x9f   : > { %v438_v4 = vrot.slane %v2461_v2, 1  ;;  %v430_v5 = vld [vmem:[#allocation8] sm:$0xff]  ;;  %1684 = vmatpush3.msra.mxu1 %v449_v0  ;;  %1716 = vmatpush3.msra.mxu0 %v2458_v1  ;;  %v439_v7 = vrot.slane %v2465_v3, 1  ;;  %v2474_v8 = vld [vmem:[%s2441_s0 + $0x8] sm:$0xff]  ;;  %v2484_v15 = vld [vmem:[%s2433_s13 + $0x18] sm:$0xff]  ;;  %v638_v41 = vrot.slane %v2461_v2, 2 }
  0xa0   : > { %v2469_v6 = vld [vmem:[%s2441_s0] sm:$0xff]  ;;  %v972_v10 = vld [vmem:[#allocation8 + $0x28] sm:$0xff]  ;;  %v2478_v11 = vld [vmem:[%s2433_s13 + $0x10] sm:$0x3]  ;;  %1691 = vmatprep.subr.mxu1 %v430_v5  ;;  %v853_v12 = vrot.slane %v2474_v8, 1  ;;  %v443_v19 = vrot.slane %v2484_v15, 1 }
  0xa1   : > { %v852_v9 = vrot.slane %v2469_v6, 1  ;;  %1723 = vmatprep.subr.mxu0 %v972_v10  ;;  %v441_v13 = vrot.slane %v2478_v11, 1  ;;  %v420_v14 = vld [vmem:[%s2441_s0 + $0x10] sm:$0x3]  ;;  %v440_v16 = vsel %vm437_vm0, %v438_v4, %v439_v7  ;;  %v2488_v18 = vld [vmem:[%s2433_s13 + $0x20] sm:$0xff]  ;;  %v961_v27 = vrot.slane %v2469_v6, 2 }
  0xa2   : > { %v855_v17 = vrot.slane %v420_v14, 1  ;;  %v2492_v20 = vld [vmem:[%s2433_s13 + $0x28] sm:$0x3]  ;;  %1685 = vmatprep.mubr.msk.f32.mxu1 %vm450_vm1, %v440_v16  ;;  %v444_v23 = vrot.slane %v2488_v18, 1  ;;  %v962_v28 = vrot.slane %v2474_v8, 2  ;;  %v1071_v31 = vld [vmem:[#allocation8 + $0x30] sm:$0xff] }
  0xa3   : > { %v854_v21 = vsel %vm437_vm0, %v852_v9, %v853_v12  ;;  %v442_v22 = vsel %vm437_vm0, %v439_v7, %v441_v13  ;;  %v446_v24 = vrot.slane %v2492_v20, 1  ;;  %v2508_v32 = vld [vmem:[%s2441_s0 + $0x18] sm:$0xff]  ;;  %v2511_v33 = vld [vmem:[%s2441_s0 + $0x20] sm:$0xff]  ;;  %v964_v34 = vrot.slane %v420_v14, 2  ;;  %v2517_v36 = vld [vmem:[%s2441_s0 + $0x28] sm:$0x3] }
  0xa4   : > { %1717 = vmatprep.mubr.msk.f32.mxu0 %vm450_vm1, %v854_v21  ;;  %1686 = vmatmul.mubr.msk.f32.vlgmr.msra.gmra.mrb[0].mxu1 %vm450_vm1, %v442_v22  ;;  %v856_v25 = vsel %vm437_vm0, %v853_v12, %v855_v17  ;;  %v445_v29 = vsel %vm437_vm0, %v443_v19, %v444_v23  ;;  %v963_v35 = vsel %vm637_vm2, %v961_v27, %v962_v28  ;;  %v966_v37 = vrot.slane %v2508_v32, 2  ;;  %v748_v44 = vld [vmem:[#allocation8 + $0x18] sm:$0xff]  ;;  %v424_v49 = vld [vmem:[%s2448_s9] sm:$0xff]  ;;  %v426_v58 = vld [vmem:[%s2448_s9 + $0x10] sm:$0x3]  ;;  %s409_s28 = scalar_lea.vmem [#allocation10], %s1595_s27 }
  0xa5   : > { %1692 = vmatpush3.msra.mxu1 %v430_v5  ;;  %1718 = vmatmul.mubr.msk.f32.vlgmr.msra.gmra.mrb[0].mxu0 %vm450_vm1, %v856_v25  ;;  %v447_v30 = vsel %vm437_vm0, %v444_v23, %v446_v24  ;;  %v967_v38 = vrot.slane %v2511_v33, 2  ;;  %v965_v39 = vsel %vm637_vm2, %v962_v28, %v964_v34  ;;  %v969_v40 = vrot.slane %v2517_v36, 2  ;;  %v1186_v46 = vld [vmem:[#allocation8 + $0x38] sm:$0xff]  ;;  %v1295_v61 = vld [vmem:[#allocation8 + $0x40] sm:$0xff] }
  0xa6   : > { %1724 = vmatpush3.msra.mxu0 %v972_v10  ;;  %1688 = vmatprep.mubr.msk.f32.mxu1 %vm450_vm1, %v445_v29  ;;  %v639_v42 = vrot.slane %v2465_v3, 2  ;;  %v641_v45 = vrot.slane %v2478_v11, 2  ;;  %v643_v50 = vrot.slane %v2484_v15, 2  ;;  %v644_v51 = vrot.slane %v2488_v18, 2  ;;  %v425_v54 = vld [vmem:[%s2448_s9 + $0x8] sm:$0xff]  ;;  %v427_v59 = vld [vmem:[%s2448_s9 + $0x18] sm:$0xff] }
  0xa7   : > { %1699 = vmatprep.subr.mxu1 %v649_v26  ;;  %1725 = vmatprep.mubr.msk.f32.mxu0 %vm450_vm1, %v963_v35  ;;  %v968_v43 = vsel %vm637_vm2, %v966_v37, %v967_v38  ;;  %v970_v47 = vsel %vm637_vm2, %v967_v38, %v969_v40  ;;  %v646_v53 = vrot.slane %v2492_v20, 2  ;;  %v1175_v55 = vrot.slane %v424_v49, 1  ;;  %v428_v62 = vld [vmem:[%s2448_s9 + $0x20] sm:$0xff] }
  0xa8   : > { %1689 = vmatmul.mubr.msk.f32.gmra.mrb[2].mxu1 %vm450_vm1, %v447_v30  ;;  %1731 = vmatprep.subr.mxu0 %v1071_v31  ;;  %v640_v48 = vsel %vm637_vm2, %v638_v41, %v639_v42  ;;  %v642_v52 = vsel %vm637_vm2, %v639_v42, %v641_v45  ;;  %v645_v56 = vsel %vm637_vm2, %v643_v50, %v644_v51  ;;  %v1176_v57 = vrot.slane %v425_v54, 1 }
  0xa9   : > { %1693 = vmatprep.mubr.msk.f32.mxu1 %vm450_vm1, %v2461_v2  ;;  %v647_v60 = vsel %vm637_vm2, %v644_v51, %v646_v53  ;;  %v1178_v63 = vrot.slane %v426_v58, 1  ;;  %v429_v2 = vld [vmem:[%s2448_s9 + $0x28] sm:$0x3]  ;;  %v1181_v4 = vrot.slane %v428_v62, 1  ;;  %v857_v9 = vrot.slane %v2508_v32, 1 }
  0xaa   : > { %v1177_v0 = vsel %vm437_vm0, %v1175_v55, %v1176_v57  ;;  %v1183_v7 = vrot.slane %v429_v2, 1  ;;  %v858_v10 = vrot.slane %v2511_v33, 1  ;;  %v1284_v11 = vrot.slane %v424_v49, 2 }
  0xab   : > { %v1179_v5 = vsel %vm437_vm0, %v1176_v57, %v1178_v63  ;;  %v1285_v12 = vrot.slane %v425_v54, 2  ;;  %v1287_v14 = vrot.slane %v426_v58, 2  ;;  %v1289_v16 = vrot.slane %v427_v59, 2 }
  0xac   : > { %1694 = vmatmul.mubr.msk.f32.vlgmr.msra.gmra.mrb[0].mxu1 %vm450_vm1, %v2465_v3  ;;  %v1180_v3 = vrot.slane %v427_v59, 1  ;;  %v1290_v17 = vrot.slane %v428_v62, 2  ;;  %v1292_v19 = vrot.slane %v429_v2, 2 }
  0xad   : > { %1700 = vmatpush3.msra.mxu1 %v649_v26  ;;  %1726 = vmatmul.mubr.msk.f32.vlgmr.msra.gmra.mrb[0].mxu0 %vm450_vm1, %v965_v39 }
  0xae   : > { %1732 = vmatpush3.msra.mxu0 %v1071_v31  ;;  %1696 = vmatprep.mubr.msk.f32.mxu1 %vm450_vm1, %v2484_v15  ;;  %v1182_v13 = vsel %vm437_vm0, %v1180_v3, %v1181_v4  ;;  %v859_v15 = vsel %vm437_vm0, %v857_v9, %v858_v10  ;;  %v1291_v20 = vsel %vm637_vm2, %v1289_v16, %v1290_v17 }
  0xaf   : > { %1728 = vmatprep.mubr.msk.f32.mxu0 %vm450_vm1, %v968_v43  ;;  %1707 = vmatprep.subr.mxu1 %v748_v44  ;;  %v1293_v22 = vsel %vm637_vm2, %v1290_v17, %v1292_v19 }
  0xb0   : > { %1697 = vmatmul.mubr.msk.f32.gmra.mrb[2].mxu1 %vm450_vm1, %v2488_v18  ;;  %1739 = vmatprep.subr.mxu0 %v1186_v46  ;;  %v1288_v18 = vsel %vm637_vm2, %v1285_v12, %v1287_v14 }
  0xb1   : > { %1729 = vmatmul.mubr.msk.f32.gmra.mrb[2].mxu0 %vm450_vm1, %v970_v47  ;;  %1701 = vmatprep.mubr.msk.f32.mxu1 %vm450_vm1, %v640_v48 }
  0xb2   : > { %1733 = vmatprep.mubr.msk.f32.mxu0 %vm450_vm1, %v424_v49 }
  0xb4   : > { %1702 = vmatmul.mubr.msk.f32.vlgmr.msra.gmra.mrb[0].mxu1 %vm450_vm1, %v642_v52 }
  0xb5   : > { %1708 = vmatpush3.msra.mxu1 %v748_v44  ;;  %1734 = vmatmul.mubr.msk.f32.vlgmr.msra.gmra.mrb[0].mxu0 %vm450_vm1, %v425_v54 }
  0xb6   : > { %1740 = vmatpush3.msra.mxu0 %v1186_v46  ;;  %1704 = vmatprep.mubr.msk.f32.mxu1 %vm450_vm1, %v645_v56 }
  0xb7   : > { %1736 = vmatprep.mubr.msk.f32.mxu0 %vm450_vm1, %v427_v59  ;;  %1755 = vmatprep.subr.mxu1 %v2458_v1 }
  0xb8   : > { %1705 = vmatmul.mubr.msk.f32.gmra.mrb[2].mxu1 %vm450_vm1, %v647_v60  ;;  %1747 = vmatprep.subr.mxu0 %v1295_v61 }
  0xb9   : > { %1737 = vmatmul.mubr.msk.f32.gmra.mrb[2].mxu0 %vm450_vm1, %v428_v62  ;;  %1709 = vmatprep.mubr.msk.f32.mxu1 %vm450_vm1, %v2469_v6  ;;  %v1184_v6 = vsel %vm437_vm0, %v1181_v4, %v1183_v7 }
  0xba   : > { %1741 = vmatprep.mubr.msk.f32.mxu0 %vm450_vm1, %v1177_v0 }
  0xbc   : > { %1710 = vmatmul.mubr.msk.f32.vlgmr.msra.gmra.mrb[0].mxu1 %vm450_vm1, %v2474_v8  ;;  %v1286_v8 = vsel %vm637_vm2, %v1284_v11, %v1285_v12 }
  0xbd   : > { %1756 = vmatpush3.msra.mxu1 %v2458_v1  ;;  %1742 = vmatmul.mubr.msk.f32.vlgmr.msra.gmra.mrb[0].mxu0 %vm450_vm1, %v1179_v5  ;;  %v860_v1 = vrot.slane %v2517_v36, 1 }
  0xbe   : > { %1748 = vmatpush3.msra.mxu0 %v1295_v61  ;;  %1712 = vmatprep.mubr.msk.f32.mxu1 %vm450_vm1, %v2508_v32 }
  0xbf   : > { %1744 = vmatprep.mubr.msk.f32.mxu0 %vm450_vm1, %v1182_v13  ;;  %v861_v21 = vsel %vm437_vm0, %v858_v10, %v860_v1 }
  0xc0   : > { %1713 = vmatmul.mubr.msk.f32.gmra.mrb[2].mxu1 %vm450_vm1, %v2511_v33 }
  0xc1   : > { %1745 = vmatmul.mubr.msk.f32.gmra.mrb[2].mxu0 %vm450_vm1, %v1184_v6  ;;  %1720 = vmatprep.mubr.msk.f32.mxu1 %vm450_vm1, %v859_v15 }
  0xc2   : > { %1749 = vmatprep.mubr.msk.f32.mxu0 %vm450_vm1, %v1286_v8 }
  0xc5   : > { %1750 = vmatmul.mubr.msk.f32.vlgmr.msra.gmra.mrb[0].mxu0 %vm450_vm1, %v1288_v18 }
  0xc6   : > { %1752 = vmatprep.mubr.msk.f32.mxu0 %vm450_vm1, %v1291_v20 }
  0xc8   : > { %1721 = vmatmul.mubr.msk.f32.vlgmr.msra.gmra.mrb[2].mxu1 %vm450_vm1, %v861_v21 }
  0xc9   : > { %1753 = vmatmul.mubr.msk.f32.gmra.mrb[2].mxu0 %vm450_vm1, %v1293_v22 }
 0x18f   : > { %v1711_v23 = vpop.f32.mrb[0].mxu1 }
 0x190   : > { %v827_v24 = vpop.f32.mrb[1].mxu1 }
 0x198   : > { %v1751_v25 = vpop.f32.mrb[0].mxu0 }
 0x199   : > { %v1757_v26 = vadd.f32 %v1751_v25, %v1711_v23  ;;  %v1370_v27 = vpop.f32.mrb[1].mxu0 }
 0x19a   : > { %v1758_v28 = vadd.f32 %v1370_v27, %v827_v24 }
 0x19b   : > { %1394 = vst [vmem:[%s409_s28 + $0x8] sm:$0xff] %v1757_v26  ;;  %v1722_v29 = vpop.f32.mrb[2].mxu1 }
 0x19c   : > { %1393 = vst [vmem:[%s409_s28] sm:$0xff] %v1758_v28  ;;  %v1754_v30 = vpop.f32.mrb[2].mxu0  ;;  %v948_v31 = vpop.f32.mrb[3].mxu1 }
 0x19d   : > { %v1759_v32 = vadd.f32 %v1754_v30, %v1722_v29  ;;  %v1380_v33 = vpop.f32.mrb[3].mxu0 }
 0x19e   : > { %v1760_v34 = vadd.f32 %v1380_v33, %v948_v31 }
 0x19f   : > { %1396 = vst [vmem:[%s409_s28 + $0x18] sm:$0xff] %v1759_v32 }
 0x1a0   : > { %1395 = vst [vmem:[%s409_s28 + $0x10] sm:$0xff] %v1760_v34 }
 0x1a1   : > { %s2712_s8 = sld [smem:[#allocation29_spill]]  ;;  %s2713_s21 = sld [smem:[#allocation35_spill]] }
 0x1a2   : > { %s1428_s11 = sshll.u32 %s409_s28, 4  ;;  %s2714_s4 = sld [smem:[#allocation39_spill]]  ;;  %s1429_s11 = int_to_ptr.vmem [resolvable:$true] %s1428_s11 }
 0x1a3   : > { %s2135_s12 = smov 256   ;;  %s2136_s5 = smov 4096  }
 0x1a4   : > { %s2137_s7 = smov 2   ;;  %s2138_s13 = smov 128  }
 0x1a5   : > { %s2139_s10 = smov 8   ;;  %s2140_s18 = smov [#allocation17]  }
 0x1a6   : > { %s2141_s24 = smov 0  }
 0x1a7   : > { %s1637_s25 = sshll.u32 %s2712_s8, 8  ;;  %p2715_p9 = scmp.ne.s32.totalorder %s2713_s21, 0 }
 0x1a8   : > { %s1411_s3 = scalar_lea.hbm %s2714_s4, %s1637_s25 }
 0x1a9   : > { %1827 = sst [smem:[#allocation18]] (%p2715_p9), %s2135_s12 }
 0x1aa   : > { %1828 = sst [smem:[#allocation18 + $0x1]] (%p2715_p9), %s2136_s5 }
 0x1ab   : > { %1829 = sst [smem:[#allocation18 + $0x2]] (%p2715_p9), %s2137_s7 }
 0x1ac   : > { %1830 = sst [smem:[#allocation18 + $0x3]] (%p2715_p9), %s2138_s13 }
 0x1ad   : > { %1831 = sst [smem:[#allocation18 + $0x4]] (%p2715_p9), %s2138_s13 }
 0x1ae   : > { %1832 = sst [smem:[#allocation18 + $0x5]] (%p2715_p9), %s2139_s10 }
 0x1af   : > { %1833 = dma.general (%p2715_p9), %s1429_s11, 512, %s1411_s3, %s1398_s30, %s2140_s18, [#allocation18], %s2141_s24, 0  }
 0x1b0 PF: > { %s2716_s23 = sld [smem:[#allocation27_spill]]  ;;  %s2717_s0 = sld [smem:[#allocation36_spill]] }
 0x1b1   : > { %p1845_p2 = scmp.ge.s32.totalorder %s2112_s26, 2 }
 0x1b6   : > { %s1456_s29 = sand.u32 1, %s2716_s23   ;;  %p2718_p13 = scmp.ne.s32.totalorder %s2717_s0, 0 }
 0x1b7   : > { %s1457_s6 = scalar_lea.sflag [#allocation4], %s1456_s29 }
 0x1b8   : > { %p1840_p1 = pnand %p1845_p2, %p2718_p13 }
 0x1ba   : > { %2063 = dma.done.wait (!%p1840_p1), %s1457_s6, 512  }
 0x1bb   : > { %2065 = vsyncadd (!%p1840_p1), %s1457_s6, 4294966784  ;;  %s24_s26 = sadd.s32 1, %s2112_s26   ;;  %s2719_s9 = sld [smem:[#allocation34_spill]] }
 0x1bc   : > { %p21_p7 = scmp.ge.s32.totalorder %s24_s26, 18   ;;  %s2720_s27 = sld [smem:[#allocation33_spill]] }
 0x1bd   : > { %s2721_s28 = sld [smem:[#allocation28_spill]]  ;;  %s2722_s23 = sld [smem:[#allocation32_spill]] }
 0x1be   : > { %s2723_s24 = sld [smem:[#allocation30_spill]]  ;;  %s2724_s25 = sld [smem:[#allocation31_spill]] }
 0x1bf   : > { %s2725_s15 = smov %s2072_s16  ;;  %s2726_s16 = smov %s2076_s17 }
 0x1c0   : > { %s2728_s18 = smov %s2084_s19  ;;  %s2729_s19 = smov %s2088_s20 }
 0x1c1   : > { %s2727_s17 = smov %s2719_s9  ;;  %s2731_s21 = smov %s2096_s22 }
 0x1c2   : > { %s2730_s20 = smov %s2720_s27  ;;  %23 = sbr.rel (!%p21_p7) target bundleno = 16 (0x10), region = 138 }
 0x1c3   : > { %s2732_s22 = smov %s2721_s28 }
 0x1c9   :  { %1462 = vsyncpa [#allocation3], 1 }
 0x1ca   :  { %1464 = vsyncpa [#allocation3 + $0x1], 1 }
 0x1cb   :  { %1465 = vsyncpa [#allocation6], 1 }
 0x1cc   :  { %1467 = vsyncpa [#allocation6 + $0x1], 1 }
 0x1cd   :  { %1468 = vsyncpa [#allocation9], 1 }
 0x1ce   :  { %1469 = vsyncpa [#allocation4], 1 }
 0x1cf   :  { %1471 = vsyncpa [#allocation4 + $0x1], 1 }

</bundles_post_ra>
